<compile_context>
chip_gen: v7x
topology: tpu7x:2x2x1
jax: 0.10.0
libtpu: 0.0.40
codegen_flags: <defaults>
</compile_context>

<pallas_src>
import functools

import jax
import jax.numpy as jnp
from jax.experimental import pallas as pl
from jax.experimental.pallas import tpu as pltpu

D_IN = 200
H1, H2, H3 = 128, 64, 32
LANES = 128

# Flipped to False after the first call if the packed-output reshape does not
# lower on this Mosaic build; subsequent calls then use the padded path.
_PACK_OK = True


def _round_up(x, m):
    return ((x + m - 1) // m) * m


def _cdiv(a, b):
    return (a + b - 1) // b


def _mlp_kernel(x_ref,
                w1_ref, b1_ref,
                w2_ref, b2_ref,
                w3_ref, b3_ref,
                w4_ref, b4_ref,
                o_ref, *, pack_p):
    # All matmuls: bf16 operands, f32 accumulation on the MXU.  The f32->bf16
    # cast of the activations happens here (no extra wrapper-side HBM pass).
    x = x_ref[...].astype(jnp.bfloat16)
    h = jnp.dot(x, w1_ref[...], preferred_element_type=jnp.float32)
    h = jnp.maximum(h + b1_ref[...], 0.0).astype(jnp.bfloat16)

    h = jnp.dot(h, w2_ref[...], preferred_element_type=jnp.float32)
    h = jnp.maximum(h + b2_ref[...], 0.0).astype(jnp.bfloat16)

    h = jnp.dot(h, w3_ref[...], preferred_element_type=jnp.float32)
    h = jnp.maximum(h + b3_ref[...], 0.0).astype(jnp.bfloat16)

    h = jnp.dot(h, w4_ref[...], preferred_element_type=jnp.float32)
    h = jnp.maximum(h + b4_ref[...], 0.0)   # (rows, num_tags) or (rows, 128)

    if pack_p > 1:
        rows, nt = h.shape
        # Pack P consecutive rows into one lane-dense 128-wide output row so
        # only the real num_tags floats per input row are written to HBM.
        h = h.reshape(rows // pack_p, pack_p * nt)

    o_ref[...] = h.astype(o_ref.dtype)


def _pallas_forward(x2d, prep, *, num_tags, pack_p, row_tile, buffered):
    n_rows = x2d.shape[0]

    # Row tile: multiple of 8*pack_p (sublane + packing alignment).  Cap it so
    # the "parallel" row grid has >= 2 steps whenever possible (v7x: 2 TCs).
    quant = 8 * pack_p
    row_tile = max(quant, (row_tile // quant) * quant)
    row_tile = max(quant, min(row_tile, _round_up(_cdiv(n_rows, 2), quant)))
    n_steps = _cdiv(n_rows, row_tile)

    # Only the tiny single-tile case gets an explicit pad (negligible bytes);
    # ragged final tiles of multi-step grids use Pallas partial-block handling.
    if n_rows < row_tile:
        x2d = jnp.pad(x2d, ((0, row_tile - n_rows), (0, 0)))

    if pack_p > 1:
        w4, b4 = prep["w4"], prep["b4"]          # (32, num_tags) bf16 / (1, num_tags) f32
        out_w = pack_p * num_tags                # == 128 (lane dense)
    else:
        w4, b4 = prep["w4_pad"], prep["b4_pad"]  # zero-padded to a 128 multiple
        out_w = w4.shape[1]
    out_rows = n_steps * (row_tile // pack_p)

    def rep(shape):                              # fully-resident weight blocks
        return pl.BlockSpec(shape, lambda i: (0,) * len(shape))

    if buffered:
        x_spec = pl.BlockSpec((row_tile, D_IN), lambda i: (i, 0),
                              pipeline_mode=pl.Buffered(3))
    else:
        x_spec = pl.BlockSpec((row_tile, D_IN), lambda i: (i, 0))

    out2d = pl.pallas_call(
        functools.partial(_mlp_kernel, pack_p=pack_p),
        out_shape=jax.ShapeDtypeStruct((out_rows, out_w), jnp.float32),
        grid_spec=pltpu.PrefetchScalarGridSpec(
            num_scalar_prefetch=0,
            grid=(n_steps,),
            in_specs=[
                x_spec,
                rep((D_IN, H1)), rep((1, H1)),
                rep((H1, H2)), rep((1, H2)),
                rep((H2, H3)), rep((1, H3)),
                rep(tuple(w4.shape)), rep(tuple(b4.shape)),
            ],
            out_specs=pl.BlockSpec((row_tile // pack_p, out_w), lambda i: (i, 0)),
        ),
        compiler_params=pltpu.CompilerParams(
            dimension_semantics=("parallel",),
            vmem_limit_bytes=64 * 1024 * 1024),
    )(x2d,
      prep["w1"], prep["b1"],
      prep["w2"], prep["b2"],
      prep["w3"], prep["b3"],
      w4, b4)

    if pack_p > 1:
        # Row-major unpack: (out_rows, P*nt) -> (out_rows*P, nt) is a pure view.
        out2d = out2d.reshape(out_rows * pack_p, num_tags)
        return out2d[:n_rows]
    return out2d[:n_rows, :num_tags]


def w2v_forward(word, mask, prep, *, row_tile=1024):
    """word: (B, S, 200) float32; mask is unused by the reference forward."""
    del mask  # unused in the PyTorch forward
    global _PACK_OK
    B, S, D = word.shape
    assert D == D_IN
    num_tags = prep["num_tags"]
    n_rows = B * S
    x2d = word.reshape(n_rows, D)  # pure view: no cast, no copy

    if prep["pack_p"] > 1 and _PACK_OK:
        try:
            out2d = _pallas_forward(x2d, prep, num_tags=num_tags,
                                    pack_p=prep["pack_p"],
                                    row_tile=row_tile, buffered=True)
            return out2d.reshape(B, S, num_tags)
        except Exception:
            _PACK_OK = False  # fall back to the validated padded-output path

    out2d = _pallas_forward(x2d, prep, num_tags=num_tags,
                            pack_p=1, row_tile=row_tile, buffered=False)
    return out2d.reshape(B, S, num_tags)


def prepare_params(params):
    """One-time parameter prep (hoisted off the per-call hot path)."""
    num_tags = params["w4"].shape[1]
    pack_p = LANES // num_tags if (num_tags < LANES and LANES % num_tags == 0) else 1
    out_pad = _round_up(num_tags, LANES)
    w4_bf16 = params["w4"].astype(jnp.bfloat16)
    b4_f32 = params["b4"].astype(jnp.float32)
    return {
        "num_tags": num_tags,
        "pack_p": pack_p,
        "w1": params["w1"].astype(jnp.bfloat16), "b1": params["b1"].astype(jnp.float32),
        "w2": params["w2"].astype(jnp.bfloat16), "b2": params["b2"].astype(jnp.float32),
        "w3": params["w3"].astype(jnp.bfloat16), "b3": params["b3"].astype(jnp.float32),
        # Packed head (real num_tags lanes, no padding).
        "w4": w4_bf16, "b4": b4_f32,
        # Padded head for the lane-dense fallback path.
        "w4_pad": jnp.zeros((H3, out_pad), jnp.bfloat16).at[:, :num_tags].set(w4_bf16),
        "b4_pad": jnp.zeros((1, out_pad), jnp.float32).at[:, :num_tags].set(b4_f32),
    }


def init_params(key, num_tags):
    """PyTorch-style uniform(-1/sqrt(fan_in), 1/sqrt(fan_in)) init, deterministic."""
    dims = [(D_IN, H1), (H1, H2), (H2, H3), (H3, num_tags)]
    params = {}
    for n, (fan_in, fan_out) in enumerate(dims, start=1):
        key, kw, kb = jax.random.split(key, 3)
        bound = 1.0 / (fan_in ** 0.5)
        params[f"w{n}"] = jax.random.uniform(
            kw, (fan_in, fan_out), jnp.float32, -bound, bound)
        params[f"b{n}"] = jax.random.uniform(
            kb, (1, fan_out), jnp.float32, -bound, bound)
    return params


def reference_forward_f32(word, params):
    """Pure f32 reference matching the PyTorch module exactly."""
    h = word
    for n in range(1, 5):
        h = jnp.maximum(h @ params[f"w{n}"] + params[f"b{n}"], 0.0)
    return h


def reference_forward_bf16(word, params):
    """Reference matching the kernel's numerics (bf16 operands, f32 accumulate)."""
    h = word
    for n in range(1, 5):
        h = jnp.dot(h.astype(jnp.bfloat16), params[f"w{n}"].astype(jnp.bfloat16),
                    preferred_element_type=jnp.float32)
        h = jnp.maximum(h + params[f"b{n}"], 0.0)
    return h


if __name__ == "__main__":
    B, S, NUM_TAGS = 2, 8, 8
    key = jax.random.PRNGKey(0)
    k_word, k_params = jax.random.split(key)

    word = jax.random.normal(k_word, (B, S, D_IN), jnp.float32)
    mask = jnp.ones((B, S), jnp.float32)  # unused, kept for signature parity
    params = init_params(k_params, NUM_TAGS)
    prep = prepare_params(params)

    out = jax.block_until_ready(w2v_forward(word, mask, prep))
    assert out.shape == (B, S, NUM_TAGS)

    ref16 = reference_forward_bf16(word, params)   # same numerics as the kernel
    ref32 = reference_forward_f32(word, params)    # true PyTorch-f32 semantics
    assert jnp.allclose(out, ref16, atol=2e-3, rtol=2e-3), (
        float(jnp.max(jnp.abs(out - ref16))))
    assert jnp.allclose(out, ref32, atol=5e-2, rtol=5e-2), (
        float(jnp.max(jnp.abs(out - ref32))))

    print("KERNEL_OK")
</pallas_src>

<mosaic_0001>
module attributes {stable_mosaic.version = 11 : i64} {
  func.func @_mlp_kernel(%arg0: i32, %arg1: memref<8x200xf32, #tpu.memory_space<vmem>>, %arg2: memref<200x128xbf16, #tpu.memory_space<vmem>>, %arg3: memref<1x128xf32, #tpu.memory_space<vmem>>, %arg4: memref<128x64xbf16, #tpu.memory_space<vmem>>, %arg5: memref<1x64xf32, #tpu.memory_space<vmem>>, %arg6: memref<64x32xbf16, #tpu.memory_space<vmem>>, %arg7: memref<1x32xf32, #tpu.memory_space<vmem>>, %arg8: memref<32x128xbf16, #tpu.memory_space<vmem>>, %arg9: memref<1x128xf32, #tpu.memory_space<vmem>>, %arg10: memref<8x128xf32, #tpu.memory_space<vmem>>) attributes {dimension_semantics = [#tpu.dimension_semantics<parallel>], iteration_bounds = array<i64: 2>, scalar_prefetch = 0 : i64, scratch_operands = 0 : i64, tpu.core_type = #tpu.core_type<tc>, window_params = [{transform_indices = @transform_0, window_bounds = array<i64: 8, 200>}, {pipeline_mode = #tpu.pipeline_mode<synchronous>, transform_indices = @transform_1, window_bounds = array<i64: 200, 128>}, {pipeline_mode = #tpu.pipeline_mode<synchronous>, transform_indices = @transform_2, window_bounds = array<i64: 1, 128>}, {pipeline_mode = #tpu.pipeline_mode<synchronous>, transform_indices = @transform_3, window_bounds = array<i64: 128, 64>}, {pipeline_mode = #tpu.pipeline_mode<synchronous>, transform_indices = @transform_4, window_bounds = array<i64: 1, 64>}, {pipeline_mode = #tpu.pipeline_mode<synchronous>, transform_indices = @transform_5, window_bounds = array<i64: 64, 32>}, {pipeline_mode = #tpu.pipeline_mode<synchronous>, transform_indices = @transform_6, window_bounds = array<i64: 1, 32>}, {pipeline_mode = #tpu.pipeline_mode<synchronous>, transform_indices = @transform_7, window_bounds = array<i64: 32, 128>}, {pipeline_mode = #tpu.pipeline_mode<synchronous>, transform_indices = @transform_8, window_bounds = array<i64: 1, 128>}, {transform_indices = @transform_9, window_bounds = array<i64: 8, 128>}]} {
    %c0 = arith.constant 0 : index
    %c0_0 = arith.constant 0 : index
    %0 = vector.load %arg1[%c0, %c0_0] : memref<8x200xf32, #tpu.memory_space<vmem>>, vector<8x200xf32>
    %1 = arith.truncf %0 : vector<8x200xf32> to vector<8x200xbf16>
    %c0_1 = arith.constant 0 : index
    %c0_2 = arith.constant 0 : index
    %2 = vector.load %arg2[%c0_1, %c0_2] : memref<200x128xbf16, #tpu.memory_space<vmem>>, vector<200x128xbf16>
    %cst = arith.constant dense<0.000000e+00> : vector<8x128xf32>
    %3 = tpu.matmul %1, %2, %cst {dimension_numbers = #tpu.dot_dimension_numbers<[1], [0], [0], [1], [0, 0, 1, 1], [], []>} : vector<8x200xbf16>, vector<200x128xbf16>, vector<8x128xf32> -> vector<8x128xf32>
    %c0_3 = arith.constant 0 : index
    %c0_4 = arith.constant 0 : index
    %4 = vector.load %arg3[%c0_3, %c0_4] : memref<1x128xf32, #tpu.memory_space<vmem>>, vector<1x128xf32>
    %5 = vector.broadcast %4 : vector<1x128xf32> to vector<8x128xf32>
    %6 = arith.addf %3, %5 : vector<8x128xf32>
    %cst_5 = arith.constant 0.000000e+00 : f32
    %7 = vector.broadcast %cst_5 : f32 to vector<8x128xf32>
    %8 = arith.maximumf %6, %7 : vector<8x128xf32>
    %9 = arith.truncf %8 : vector<8x128xf32> to vector<8x128xbf16>
    %c0_6 = arith.constant 0 : index
    %c0_7 = arith.constant 0 : index
    %10 = vector.load %arg4[%c0_6, %c0_7] : memref<128x64xbf16, #tpu.memory_space<vmem>>, vector<128x64xbf16>
    %cst_8 = arith.constant dense<0.000000e+00> : vector<8x64xf32>
    %11 = tpu.matmul %9, %10, %cst_8 {dimension_numbers = #tpu.dot_dimension_numbers<[1], [0], [0], [1], [0, 0, 1, 1], [], []>} : vector<8x128xbf16>, vector<128x64xbf16>, vector<8x64xf32> -> vector<8x64xf32>
    %c0_9 = arith.constant 0 : index
    %c0_10 = arith.constant 0 : index
    %12 = vector.load %arg5[%c0_9, %c0_10] : memref<1x64xf32, #tpu.memory_space<vmem>>, vector<1x64xf32>
    %13 = vector.broadcast %12 : vector<1x64xf32> to vector<8x64xf32>
    %14 = arith.addf %11, %13 : vector<8x64xf32>
    %cst_11 = arith.constant 0.000000e+00 : f32
    %15 = vector.broadcast %cst_11 : f32 to vector<8x64xf32>
    %16 = arith.maximumf %14, %15 : vector<8x64xf32>
    %17 = arith.truncf %16 : vector<8x64xf32> to vector<8x64xbf16>
    %c0_12 = arith.constant 0 : index
    %c0_13 = arith.constant 0 : index
    %18 = vector.load %arg6[%c0_12, %c0_13] : memref<64x32xbf16, #tpu.memory_space<vmem>>, vector<64x32xbf16>
    %cst_14 = arith.constant dense<0.000000e+00> : vector<8x32xf32>
    %19 = tpu.matmul %17, %18, %cst_14 {dimension_numbers = #tpu.dot_dimension_numbers<[1], [0], [0], [1], [0, 0, 1, 1], [], []>} : vector<8x64xbf16>, vector<64x32xbf16>, vector<8x32xf32> -> vector<8x32xf32>
    %c0_15 = arith.constant 0 : index
    %c0_16 = arith.constant 0 : index
    %20 = vector.load %arg7[%c0_15, %c0_16] : memref<1x32xf32, #tpu.memory_space<vmem>>, vector<1x32xf32>
    %21 = vector.broadcast %20 : vector<1x32xf32> to vector<8x32xf32>
    %22 = arith.addf %19, %21 : vector<8x32xf32>
    %cst_17 = arith.constant 0.000000e+00 : f32
    %23 = vector.broadcast %cst_17 : f32 to vector<8x32xf32>
    %24 = arith.maximumf %22, %23 : vector<8x32xf32>
    %25 = arith.truncf %24 : vector<8x32xf32> to vector<8x32xbf16>
    %c0_18 = arith.constant 0 : index
    %c0_19 = arith.constant 0 : index
    %26 = vector.load %arg8[%c0_18, %c0_19] : memref<32x128xbf16, #tpu.memory_space<vmem>>, vector<32x128xbf16>
    %cst_20 = arith.constant dense<0.000000e+00> : vector<8x128xf32>
    %27 = tpu.matmul %25, %26, %cst_20 {dimension_numbers = #tpu.dot_dimension_numbers<[1], [0], [0], [1], [0, 0, 1, 1], [], []>} : vector<8x32xbf16>, vector<32x128xbf16>, vector<8x128xf32> -> vector<8x128xf32>
    %c0_21 = arith.constant 0 : index
    %c0_22 = arith.constant 0 : index
    %28 = vector.load %arg9[%c0_21, %c0_22] : memref<1x128xf32, #tpu.memory_space<vmem>>, vector<1x128xf32>
    %29 = vector.broadcast %28 : vector<1x128xf32> to vector<8x128xf32>
    %30 = arith.addf %27, %29 : vector<8x128xf32>
    %cst_23 = arith.constant 0.000000e+00 : f32
    %31 = vector.broadcast %cst_23 : f32 to vector<8x128xf32>
    %32 = arith.maximumf %30, %31 : vector<8x128xf32>
    %c0_24 = arith.constant 0 : index
    %c0_25 = arith.constant 0 : index
    %33 = vector.load %arg10[%c0_24, %c0_25] : memref<8x128xf32, #tpu.memory_space<vmem>>, vector<8x128xf32>
    tpu.vector_store %arg10[%c0_24, %c0_25], %32 {strides = array<i32>} : memref<8x128xf32, #tpu.memory_space<vmem>>, vector<8x128xf32>,
    return
  }
  func.func @transform_0(%arg0: i32) -> (i32, i32) {
    %c0_i32 = arith.constant 0 : i32
    %c0_i32_0 = arith.constant 0 : i32
    return %arg0, %c0_i32 : i32, i32
  }
  func.func @transform_1(%arg0: i32) -> (i32, i32) {
    %c0_i32 = arith.constant 0 : i32
    %c0_i32_0 = arith.constant 0 : i32
    %c0_i32_1 = arith.constant 0 : i32
    return %c0_i32, %c0_i32_0 : i32, i32
  }
  func.func @transform_2(%arg0: i32) -> (i32, i32) {
    %c0_i32 = arith.constant 0 : i32
    %c0_i32_0 = arith.constant 0 : i32
    %c0_i32_1 = arith.constant 0 : i32
    return %c0_i32, %c0_i32_0 : i32, i32
  }
  func.func @transform_3(%arg0: i32) -> (i32, i32) {
    %c0_i32 = arith.constant 0 : i32
    %c0_i32_0 = arith.constant 0 : i32
    %c0_i32_1 = arith.constant 0 : i32
    return %c0_i32, %c0_i32_0 : i32, i32
  }
  func.func @transform_4(%arg0: i32) -> (i32, i32) {
    %c0_i32 = arith.constant 0 : i32
    %c0_i32_0 = arith.constant 0 : i32
    %c0_i32_1 = arith.constant 0 : i32
    return %c0_i32, %c0_i32_0 : i32, i32
  }
  func.func @transform_5(%arg0: i32) -> (i32, i32) {
    %c0_i32 = arith.constant 0 : i32
    %c0_i32_0 = arith.constant 0 : i32
    %c0_i32_1 = arith.constant 0 : i32
    return %c0_i32, %c0_i32_0 : i32, i32
  }
  func.func @transform_6(%arg0: i32) -> (i32, i32) {
    %c0_i32 = arith.constant 0 : i32
    %c0_i32_0 = arith.constant 0 : i32
    %c0_i32_1 = arith.constant 0 : i32
    return %c0_i32, %c0_i32_0 : i32, i32
  }
  func.func @transform_7(%arg0: i32) -> (i32, i32) {
    %c0_i32 = arith.constant 0 : i32
    %c0_i32_0 = arith.constant 0 : i32
    %c0_i32_1 = arith.constant 0 : i32
    return %c0_i32, %c0_i32_0 : i32, i32
  }
  func.func @transform_8(%arg0: i32) -> (i32, i32) {
    %c0_i32 = arith.constant 0 : i32
    %c0_i32_0 = arith.constant 0 : i32
    %c0_i32_1 = arith.constant 0 : i32
    return %c0_i32, %c0_i32_0 : i32, i32
  }
  func.func @transform_9(%arg0: i32) -> (i32, i32) {
    %c0_i32 = arith.constant 0 : i32
    %c0_i32_0 = arith.constant 0 : i32
    return %arg0, %c0_i32 : i32, i32
  }
}

</mosaic_0001>

<bundles_post_ra>
// kernel: tpu_custom_call.1
= control target key start
LH: loop header
LB: loop body
LE: loop exit
PB: predicated region body
PF: predicated region fallthrough
CT: control target
= control target key end

     0   :  { %s2139_s0 = inlined_call_operand.hbm [shape: f32[16,200], index: 0, kind: input, shape index: {}]   ;;  %s2140_s1 = inlined_call_operand.hbm [shape: bf16[200,128], index: 1, kind: input, shape index: {}]   ;;  %s2141_s2 = inlined_call_operand.hbm [shape: f32[1,128], index: 2, kind: input, shape index: {}]   ;;  %s2142_s3 = inlined_call_operand.hbm [shape: bf16[128,64], index: 3, kind: input, shape index: {}]   ;;  %s2143_s4 = inlined_call_operand.hbm [shape: f32[1,64], index: 4, kind: input, shape index: {}]   ;;  %s2144_s5 = inlined_call_operand.hbm [shape: bf16[64,32], index: 5, kind: input, shape index: {}]   ;;  %s2145_s6 = inlined_call_operand.hbm [shape: f32[1,32], index: 6, kind: input, shape index: {}]   ;;  %s2146_s7 = inlined_call_operand.hbm [shape: bf16[32,128], index: 7, kind: input, shape index: {}]   ;;  %s2147_s8 = inlined_call_operand.hbm [shape: f32[1,128], index: 8, kind: input, shape index: {}]   ;;  %s2148_s9 = inlined_call_operand.hbm [shape: f32[16,128], index: 9, kind: output, shape index: {}]  }
   0x1   :  { %2153 = sst [smem:[#allocation24_spill]] %s2140_s1 }
   0x2   :  { %2154 = sst [smem:[#allocation25_spill]] %s2148_s9 }
   0x3   :  { %14 = vsyncpa [#allocation3], 0 }
   0x4   :  { %16 = vsyncpa [#allocation3 + $0x1], 0 }
   0x5   :  { %17 = vsyncpa [#allocation6], 0 }
   0x6   :  { %18 = vsyncpa [#allocation9], 0 }
   0x7   :  { %19 = vsyncpa [#allocation12], 0 }
   0x8   :  { %20 = vsyncpa [#allocation15], 0 }
   0x9   :  { %21 = vsyncpa [#allocation4], 0 }
   0xa   :  { %23 = vsyncpa [#allocation4 + $0x1], 0  ;;  %s1729_s30 = smov 0   ;;  %s1731_s10 = smov 0  }
   0xb   :  { %s1733_s11 = smov 0   ;;  %s1735_s12 = smov 0  }
   0xc LB: > { %s1664_s13 = smov [#allocation5]   ;;  %s1750_s15 = sadd.s32 4294967295, %s1662_s12   ;;  %s1662_s12 = sphi %s1735_s12, %s2181_s12   ;;  %s1658_s11 = sphi %s1733_s11, %s2180_s11   ;;  %s1654_s10 = sphi %s1731_s10, %s2179_s10   ;;  %s1650_s30 = sphi %s1729_s30, %s2178_s30  }
   0xd   : > { %s266_s14 = sshll.u32 %s1664_s13, 4  ;;  %p1047_p0 = scmp.ge.s32.totalorder %s1662_s12, 1  ;;  %s1755_s14 = int_to_ptr.vmem [resolvable:$true] %s266_s14 }
   0xe   : > { %p2150_p1 = scmp.eq.s32.totalorder %s1750_s15, 0  ;;  %p254_p2 = scmp.lt.s32.totalorder %s1662_s12, 3 }
   0xf   : > { %s1665_s17 = smov [#allocation8]   ;;  %s1666_s20 = smov [#allocation11]  }
  0x10   : > { %p1757_p3 = pnand %p1047_p0, %p254_p2  ;;  %s290_s18 = sshll.u32 %s1665_s17, 4  ;;  %s1770_s18 = int_to_ptr.vmem [resolvable:$true] %s290_s18 }
  0x11   : > { %s314_s21 = sshll.u32 %s1666_s20, 4  ;;  %s2157_s1 = sld [smem:[#allocation24_spill]]  ;;  %s1772_s21 = int_to_ptr.vmem [resolvable:$true] %s314_s21 }
  0x12   : > { %s2155_s16 = scalar_select %p1757_p3, 1, 0 }
  0x13   : > { %p1203_p5 = pneg %p1757_p3 }
  0x15   : > { %p1766_p6 = pnand %p1203_p5, %p2150_p1 }
  0x17   : > { %s1326_s24 = scalar_lea.hbm %s2157_s1, 1600  ;;  %p1782_p8 = pneg %p1766_p6 }
  0x18   : > { %p1327_p7 = scmp.ne.s32.totalorder %s2157_s1, %s1326_s24  ;;  %p1333_p11 = scmp.lt.u32.totalorder %s1326_s24, %s2157_s1 }
  0x1a   : > { %p1329_p9 = pnand %p1782_p8, %p1327_p7 }
  0x1c   : > { %p1330_p10 = pneg %p1329_p9 }
  0x1e   : > { %p1335_p12 = pnand %p1333_p11, %p1330_p10 }
  0x20   : > { %1338 = shalt.err (!%p1335_p12)
}
  0x21   : > { %s1339_s13 = scalar_lea.vmem %s1755_s14, 1600  ;;  %p1347_p5 = scmp.lt.s32.totalorder %s1755_s14, %s1755_s14 }
  0x22   : > { %p1340_p13 = scmp.ne.s32.totalorder %s1755_s14, %s1339_s13  ;;  %p1348_p4 = scmp.lt.s32.totalorder %s1339_s13, %s1339_s13 }
  0x24   : > { %p1342_p0 = pnand %p1340_p13, %p1782_p8  ;;  %p1349_p7 = por %p1348_p4, %p1347_p5 }
  0x26   : > { %p1343_p2 = pneg %p1342_p0 }
  0x28   : > { %p1350_p9 = pnand %p1349_p7, %p1343_p2 }
  0x2a   : > { %1353 = shalt.err (!%p1350_p9)
}
  0x2b   : > { %s1667_s17 = smov 64   ;;  %s1668_s20 = smov 4  }
  0x2c   : > { %1206 = dma.hbm_to_vmem [thread:$0]  (!%p1766_p6), %s2157_s1, 1600, %s1755_s14, [#allocation6], %s1667_s17, %s1667_s17, %s1668_s20  }
  0x2d   : > { %s1354_s26 = scalar_lea.hbm %s2142_s3, 1024 }
  0x2e   : > { %p1355_p4 = scmp.ne.s32.totalorder %s2142_s3, %s1354_s26  ;;  %p1361_p12 = scmp.lt.u32.totalorder %s1354_s26, %s2142_s3 }
  0x30   : > { %p1357_p10 = pnand %p1355_p4, %p1782_p8 }
  0x32   : > { %p1358_p11 = pneg %p1357_p10 }
  0x34   : > { %p1363_p13 = pnand %p1361_p12, %p1358_p11 }
  0x36   : > { %1366 = shalt.err (!%p1363_p13)
}
  0x37   : > { %s1367_s14 = scalar_lea.vmem %s1770_s18, 1024  ;;  %p1375_p7 = scmp.lt.s32.totalorder %s1770_s18, %s1770_s18 }
  0x38   : > { %p1368_p0 = scmp.ne.s32.totalorder %s1770_s18, %s1367_s14  ;;  %p1376_p9 = scmp.lt.s32.totalorder %s1367_s14, %s1367_s14 }
  0x3a   : > { %p1370_p2 = pnand %p1368_p0, %p1782_p8  ;;  %p1377_p4 = por %p1376_p9, %p1375_p7 }
  0x3c   : > { %p1371_p5 = pneg %p1370_p2 }
  0x3e   : > { %p1378_p10 = pnand %p1377_p4, %p1371_p5 }
  0x40   : > { %1381 = shalt.err (!%p1378_p10)
}
  0x41   : > { %1212 = dma.hbm_to_vmem [thread:$0]  (!%p1766_p6), %s2142_s3, 1024, %s1770_s18, [#allocation9], %s1667_s17, %s1667_s17, %s1668_s20  }
  0x42   : > { %s1382_s25 = scalar_lea.hbm %s2144_s5, 512 }
  0x43   : > { %p1383_p11 = scmp.ne.s32.totalorder %s2144_s5, %s1382_s25  ;;  %p1389_p0 = scmp.lt.u32.totalorder %s1382_s25, %s2144_s5 }
  0x45   : > { %p1385_p12 = pnand %p1383_p11, %p1782_p8 }
  0x47   : > { %p1386_p13 = pneg %p1385_p12 }
  0x49   : > { %p1391_p2 = pnand %p1389_p0, %p1386_p13 }
  0x4b   : > { %1394 = shalt.err (!%p1391_p2)
}
  0x4c   : > { %s1395_s18 = scalar_lea.vmem %s1772_s21, 512  ;;  %p1403_p4 = scmp.lt.s32.totalorder %s1772_s21, %s1772_s21 }
  0x4d   : > { %p1396_p5 = scmp.ne.s32.totalorder %s1772_s21, %s1395_s18  ;;  %p1404_p10 = scmp.lt.s32.totalorder %s1395_s18, %s1395_s18 }
  0x4f   : > { %p1398_p7 = pnand %p1396_p5, %p1782_p8  ;;  %p1405_p11 = por %p1404_p10, %p1403_p4 }
  0x51   : > { %p1399_p9 = pneg %p1398_p7 }
  0x53   : > { %p1406_p12 = pnand %p1405_p11, %p1399_p9 }
  0x55   : > { %1409 = shalt.err (!%p1406_p12)
}
  0x56   : > { %1218 = dma.hbm_to_vmem [thread:$0]  (!%p1766_p6), %s2144_s5, 512, %s1772_s21, [#allocation12], %s1667_s17, %s1667_s17, %s1668_s20  }
  0x57   : > { %s1669_s22 = smov [#allocation14]   ;;  %s1670_s24 = smov [#allocation7]  }
  0x58   : > { %s338_s23 = sshll.u32 %s1669_s22, 4  ;;  %s280_s25 = sshll.u32 %s1670_s24, 4  ;;  %s339_s23 = int_to_ptr.vmem [resolvable:$true] %s338_s23  ;;  %s281_s25 = int_to_ptr.vmem [resolvable:$true] %s280_s25 }
  0x59   : > { %s1410_s29 = scalar_lea.hbm %s2146_s7, 256 }
  0x5a   : > { %p1411_p13 = scmp.ne.s32.totalorder %s2146_s7, %s1410_s29  ;;  %p1417_p5 = scmp.lt.u32.totalorder %s1410_s29, %s2146_s7 }
  0x5c   : > { %p1413_p0 = pnand %p1411_p13, %p1782_p8 }
  0x5e   : > { %p1414_p2 = pneg %p1413_p0 }
  0x60   : > { %p1419_p7 = pnand %p1417_p5, %p1414_p2 }
  0x62   : > { %1422 = shalt.err (!%p1419_p7)
}
  0x63   : > { %s1423_s21 = scalar_lea.vmem %s339_s23, 256  ;;  %p1431_p11 = scmp.lt.s32.totalorder %s339_s23, %s339_s23 }
  0x64   : > { %p1424_p9 = scmp.ne.s32.totalorder %s339_s23, %s1423_s21  ;;  %p1432_p12 = scmp.lt.s32.totalorder %s1423_s21, %s1423_s21 }
  0x66   : > { %p1426_p4 = pnand %p1424_p9, %p1782_p8  ;;  %p1433_p1 = por %p1432_p12, %p1431_p11 }
  0x68   : > { %p1427_p10 = pneg %p1426_p4 }
  0x6a   : > { %p1434_p3 = pnand %p1433_p1, %p1427_p10 }
  0x6c   : > { %1437 = shalt.err (!%p1434_p3)
}
  0x6d   : > { %1224 = dma.hbm_to_vmem [thread:$0]  (!%p1766_p6), %s2146_s7, 256, %s339_s23, [#allocation15], %s1667_s17, %s1667_s17, %s1668_s20  }
  0x6e   : > { %s1438_s26 = scalar_lea.hbm %s2141_s2, 16 }
  0x6f   : > { %p1439_p1 = scmp.ne.s32.totalorder %s2141_s2, %s1438_s26  ;;  %p1445_p0 = scmp.lt.u32.totalorder %s1438_s26, %s2141_s2 }
  0x71   : > { %p1441_p3 = pnand %p1439_p1, %p1782_p8 }
  0x73   : > { %p1442_p13 = pneg %p1441_p3 }
  0x75   : > { %p1447_p2 = pnand %p1445_p0, %p1442_p13 }
  0x77   : > { %1450 = shalt.err (!%p1447_p2)
}
  0x78   : > { %s1451_s14 = scalar_lea.vmem %s281_s25, 16  ;;  %s1458_s17 = scalar_lea.vmem %s281_s25, 32 }
  0x79   : > { %p1452_p5 = scmp.ne.s32.totalorder %s281_s25, %s1451_s14  ;;  %p1459_p4 = scmp.lt.s32.totalorder %s281_s25, %s281_s25 }
  0x7a   : > { %p1460_p10 = scmp.lt.s32.totalorder %s1458_s17, %s1451_s14 }
  0x7b   : > { %p1454_p7 = pnand %p1452_p5, %p1782_p8 }
  0x7c   : > { %p1461_p11 = por %p1460_p10, %p1459_p4 }
  0x7d   : > { %p1455_p9 = pneg %p1454_p7 }
  0x7f   : > { %p1462_p12 = pnand %p1461_p11, %p1455_p9 }
  0x81   : > { %1465 = shalt.err (!%p1462_p12)
}
  0x82   : > { %1209 = dma.hbm_to_vmem [thread:$0]  (!%p1766_p6), %s2141_s2, 16, %s281_s25, [#allocation6]  }
  0x83   : > { %s1671_s21 = smov [#allocation10]   ;;  %s1672_s9 = smov [#allocation13]  }
  0x84   : > { %s304_s1 = sshll.u32 %s1671_s21, 4  ;;  %s328_s22 = sshll.u32 %s1672_s9, 4  ;;  %s305_s1 = int_to_ptr.vmem [resolvable:$true] %s304_s1  ;;  %s329_s22 = int_to_ptr.vmem [resolvable:$true] %s328_s22 }
  0x85   : > { %s1466_s28 = scalar_lea.hbm %s2143_s4, 16 }
  0x86   : > { %p1467_p1 = scmp.ne.s32.totalorder %s2143_s4, %s1466_s28  ;;  %p1473_p0 = scmp.lt.u32.totalorder %s1466_s28, %s2143_s4 }
  0x88   : > { %p1469_p3 = pnand %p1467_p1, %p1782_p8 }
  0x8a   : > { %p1470_p13 = pneg %p1469_p3 }
  0x8c   : > { %p1475_p2 = pnand %p1473_p0, %p1470_p13 }
  0x8e   : > { %1478 = shalt.err (!%p1475_p2)
}
  0x8f   : > { %s1479_s25 = scalar_lea.vmem %s305_s1, 16  ;;  %s1486_s17 = scalar_lea.vmem %s305_s1, 32 }
  0x90   : > { %p1480_p5 = scmp.ne.s32.totalorder %s305_s1, %s1479_s25  ;;  %p1487_p4 = scmp.lt.s32.totalorder %s305_s1, %s305_s1 }
  0x91   : > { %p1488_p10 = scmp.lt.s32.totalorder %s1486_s17, %s1479_s25 }
  0x92   : > { %p1482_p7 = pnand %p1480_p5, %p1782_p8 }
  0x93   : > { %p1489_p11 = por %p1488_p10, %p1487_p4 }
  0x94   : > { %p1483_p9 = pneg %p1482_p7 }
  0x96   : > { %p1490_p12 = pnand %p1489_p11, %p1483_p9 }
  0x98   : > { %1493 = shalt.err (!%p1490_p12)
}
  0x99   : > { %1215 = dma.hbm_to_vmem [thread:$0]  (!%p1766_p6), %s2143_s4, 16, %s305_s1, [#allocation9]  }
  0x9a   : > { %s1494_s24 = scalar_lea.hbm %s2145_s6, 16 }
  0x9b   : > { %p1495_p1 = scmp.ne.s32.totalorder %s2145_s6, %s1494_s24  ;;  %p1501_p0 = scmp.lt.u32.totalorder %s1494_s24, %s2145_s6 }
  0x9d   : > { %p1497_p3 = pnand %p1495_p1, %p1782_p8 }
  0x9f   : > { %p1498_p13 = pneg %p1497_p3 }
  0xa1   : > { %p1503_p2 = pnand %p1501_p0, %p1498_p13 }
  0xa3   : > { %1506 = shalt.err (!%p1503_p2)
}
  0xa4   : > { %s1507_s18 = scalar_lea.vmem %s329_s22, 16  ;;  %s1514_s1 = scalar_lea.vmem %s329_s22, 32 }
  0xa5   : > { %p1508_p5 = scmp.ne.s32.totalorder %s329_s22, %s1507_s18  ;;  %p1515_p4 = scmp.lt.s32.totalorder %s329_s22, %s329_s22 }
  0xa6   : > { %p1516_p10 = scmp.lt.s32.totalorder %s1514_s1, %s1507_s18 }
  0xa7   : > { %p1510_p7 = pnand %p1508_p5, %p1782_p8 }
  0xa8   : > { %p1517_p11 = por %p1516_p10, %p1515_p4 }
  0xa9   : > { %p1511_p9 = pneg %p1510_p7 }
  0xab   : > { %p1518_p12 = pnand %p1517_p11, %p1511_p9 }
  0xad   : > { %1521 = shalt.err (!%p1518_p12)
}
  0xae   : > { %1221 = dma.hbm_to_vmem [thread:$0]  (!%p1766_p6), %s2145_s6, 16, %s329_s22, [#allocation12]  }
  0xaf   : > { %s1673_s17 = smov [#allocation16]   ;;  %s1522_s9 = scalar_lea.hbm %s2147_s8, 16 }
  0xb0   : > { %s352_s20 = sshll.u32 %s1673_s17, 4  ;;  %p1523_p1 = scmp.ne.s32.totalorder %s2147_s8, %s1522_s9  ;;  %s353_s20 = int_to_ptr.vmem [resolvable:$true] %s352_s20 }
  0xb1   : > { %p1529_p0 = scmp.lt.u32.totalorder %s1522_s9, %s2147_s8 }
  0xb2   : > { %p1525_p3 = pnand %p1523_p1, %p1782_p8 }
  0xb4   : > { %p1526_p13 = pneg %p1525_p3 }
  0xb6   : > { %p1531_p2 = pnand %p1529_p0, %p1526_p13 }
  0xb8   : > { %1534 = shalt.err (!%p1531_p2)
}
  0xb9   : > { %s1535_s22 = scalar_lea.vmem %s353_s20, 16  ;;  %s1542_s13 = scalar_lea.vmem %s353_s20, 32 }
  0xba   : > { %p1536_p5 = scmp.ne.s32.totalorder %s353_s20, %s1535_s22  ;;  %p1543_p4 = scmp.lt.s32.totalorder %s353_s20, %s353_s20 }
  0xbb   : > { %p1544_p10 = scmp.lt.s32.totalorder %s1542_s13, %s1535_s22 }
  0xbc   : > { %p1538_p7 = pnand %p1536_p5, %p1782_p8 }
  0xbd   : > { %p1545_p11 = por %p1544_p10, %p1543_p4 }
  0xbe   : > { %p1539_p9 = pneg %p1538_p7 }
  0xc0   : > { %p1546_p12 = pnand %p1545_p11, %p1539_p9 }
  0xc2   : > { %1549 = shalt.err (!%p1546_p12)
}
  0xc3   : > { %1227 = dma.hbm_to_vmem [thread:$0]  (!%p1766_p6), %s2147_s8, 16, %s353_s20, [#allocation15]  }
  0xc4   : > { %s1046_s27 = sadd.s32 4294967294, %s1662_s12   ;;  %s1953_s19 = sadd.s32 1, %s1662_s12  }
  0xc5   : > { %s33_s14 = ssub.s32 %s1662_s12, %s1953_s19  ;;  %s36_s25 = sadd.s32 1, %s1658_s11 }
  0xc6   : > { %p34_p8 = scmp.eq.s32.totalorder %s33_s14, 0  ;;  %p43_p1 = scmp.ne.s32.totalorder %s1658_s11, %s1654_s10 }
  0xc7   : > { %p44_p3 = scmp.eq.s32.totalorder %s1662_s12, 0  ;;  %p49_p13 = scmp.ne.s32.totalorder %s1654_s10, %s1650_s30 }
  0xc8   : > { %s1964_s17 = scalar_select %p34_p8, %s1658_s11, %s36_s25  }
  0xc9   : > { %p1966_p0 = por %p44_p3, %p43_p1  ;;  %p2160_p2 = scmp.eq.s32.totalorder %s1750_s15, 0 }
  0xca   : > { %p241_p5 = scmp.eq.s32.totalorder %s1750_s15, 1  ;;  %p247_p7 = scmp.eq.s32.totalorder %s1046_s27, 1 }
  0xcb   : > { %p1972_p6 = por %p2160_p2, %p49_p13  ;;  %p1244_p9 = scmp.lt.s32.totalorder %s1662_s12, 2 }
  0xcc   : > { %s363_s21 = sand.u32 1, %s1658_s11   ;;  %p1979_p4 = por %p241_p5, %p43_p1 }
  0xcd   : > { %p1983_p10 = por %p247_p7, %p49_p13  ;;  %s1057_s26 = sshll.u32 %s363_s21, 4 }
  0xce   : > { %s2162_s9 = scalar_select %p1979_p4, 1, 0 }
  0xcf   : > { %s2163_s24 = scalar_select %p1983_p10, 1, 0 }
  0xd0   : > { %s1109_s28 = sshll.u32 %s1662_s12, 8  ;;  %s367_s18 = scalar_lea.vmem [#allocation2], %s1057_s26 }
  0xd1   : > { %s1991_s13 = scalar_lea.hbm %s2139_s0, %s1109_s28  ;;  %s375_s1 = sshll.u32 %s367_s18, 4  ;;  %s1993_s1 = int_to_ptr.vmem [resolvable:$true] %s375_s1 }
  0xd2   : > { %p1997_p11 = pnand %p1244_p9, %p1966_p0  ;;  %s364_s14 = scalar_lea.sflag [#allocation3], %s363_s21 }
  0xd3   : > { %s1550_s25 = scalar_lea.hbm %s1991_s13, 256  ;;  %s1555_s29 = scalar_lea.hbm %s2139_s0, 512 }
  0xd4   : > { %p1551_p12 = scmp.ne.s32.totalorder %s1991_s13, %s1550_s25  ;;  %p1552_p8 = pneg %p1997_p11 }
  0xd5   : > { %p1556_p13 = scmp.lt.u32.totalorder %s1991_s13, %s2139_s0  ;;  %p1557_p0 = scmp.lt.u32.totalorder %s1555_s29, %s1550_s25 }
  0xd6   : > { %p1553_p1 = pnand %p1552_p8, %p1551_p12  ;;  %p1559_p5 = scmp.lt.u32.totalorder %s1550_s25, %s1991_s13 }
  0xd7   : > { %p1558_p2 = por %p1557_p0, %p1556_p13 }
  0xd8   : > { %p1554_p3 = pneg %p1553_p1 }
  0xd9   : > { %p1560_p7 = por %p1559_p5, %p1558_p2 }
  0xdb   : > { %p1561_p9 = pnand %p1560_p7, %p1554_p3 }
  0xdd   : > { %1564 = shalt.err (!%p1561_p9)
}
  0xde   : > { %s1565_s21 = scalar_lea.vmem %s1993_s1, 256  ;;  %s1674_s18 = smov [#allocation2]  }
  0xdf   : > { %p1566_p12 = scmp.ne.s32.totalorder %s1993_s1, %s1565_s21  ;;  %s1570_s26 = sshll.u32 %s1674_s18, 4  ;;  %s1571_s26 = int_to_ptr.vmem [resolvable:$false] %s1570_s26 }
  0xe0   : > { %s1572_s28 = scalar_lea.vmem %s1571_s26, 512  ;;  %p1573_p4 = scmp.lt.s32.totalorder %s1993_s1, %s1571_s26 }
  0xe1   : > { %p1568_p1 = pnand %p1566_p12, %p1552_p8  ;;  %p1574_p13 = scmp.lt.s32.totalorder %s1572_s28, %s1565_s21 }
  0xe3   : > { %p1569_p10 = pneg %p1568_p1  ;;  %p1575_p0 = por %p1574_p13, %p1573_p4 }
  0xe5   : > { %p1576_p2 = pnand %p1575_p0, %p1569_p10 }
  0xe7   : > { %1579 = shalt.err (!%p1576_p2)
}
  0xe8   : > { %1231 = dma.hbm_to_vmem [thread:$0]  (!%p1997_p11), %s1991_s13, 256, %s1993_s1, %s364_s14  }
  0xe9   : > { %p2165_p3 = scmp.ne.s32.totalorder %s2155_s16, 0 }
  0xea   : > { %s2029_s25 = sand.u32 (!%p2165_p3), 1, %s1654_s10  }
  0xeb   : > { %384 = sbr.rel (%p2165_p3) target bundleno = 1192 (0x4a8), region = 56  ;;  %s1061_s29 = sshll.u32 (!%p2165_p3), %s2029_s25, 4 }
  0xec   : > { %s387_s23 = scalar_lea.sflag (!%p2165_p3), [#allocation3], %s2029_s25  ;;  %s2033_s22 = scalar_lea.vmem (!%p2165_p3), [#allocation2], %s1061_s29 }
  0xf2   : > { %1625 = dma.done.wait (%p1972_p6), %s387_s23, 256  }
  0xf3   : > { %1627 = vsyncadd (%p1972_p6), %s387_s23, 4294967040  ;;  %p2166_p4 = scmp.eq.s32.totalorder %s1750_s15, 0 }
  0xf5   : > { %1629 = dma.done.wait (%p2166_p4), [#allocation6], 1616   ;;  %p2167_p10 = pmov %p2166_p4 }
  0xf6   : > { %p2168_p11 = pmov %p2166_p4 }
  0xf7   : > { %1631 = vsyncadd (%p2167_p10), [#allocation6], 4294965680 }
  0xf8   : > { %1633 = dma.done.wait (%p2168_p11), [#allocation9], 1040   ;;  %p2169_p8 = pmov %p2166_p4 }
  0xf9   : > { %p2170_p5 = pmov %p2166_p4 }
  0xfa   : > { %1635 = vsyncadd (%p2169_p8), [#allocation9], 4294966256 }
  0xfb   : > { %1637 = dma.done.wait (%p2170_p5), [#allocation12], 528   ;;  %p2171_p7 = pmov %p2166_p4 }
  0xfc   : > { %p2172_p6 = pmov %p2166_p4 }
  0xfd   : > { %1639 = vsyncadd (%p2171_p7), [#allocation12], 4294966768 }
  0xfe   : > { %1641 = dma.done.wait (%p2172_p6), [#allocation15], 272   ;;  %p2173_p9 = pmov %p2166_p4 }
  0xff   : > { %v1675_v0 = vmov 0   ;;  %v1676_v1 = vmov 0.0   ;;  %v1299_v2 = vld [vmem:[#allocation5] sm:$0xff]   ;;  %v1300_v3 = vld [vmem:[#allocation5 + $0x8] sm:$0xff]   ;;  %v1301_v4 = vld [vmem:[#allocation5 + $0x10] sm:$0xff]   ;;  %vm569_vm0 = vcmask 588800  }
 0x100   : > { %1643 = vsyncadd (%p2173_p9), [#allocation15], 4294967024  ;;  %577 = vmatprep.subr.bf16.mxu0 %v1675_v0  ;;  %1127 = vmatprep.subr.bf16.mxu1 %v1676_v1  ;;  %v1302_v5 = vld [vmem:[#allocation5 + $0x18] sm:$0xff]   ;;  %v1303_v7 = vld [vmem:[#allocation5 + $0x20] sm:$0xff]   ;;  %vm573_vm1 = vcmask 1043456   ;;  %vm1677_vm2 = vmmov 0  }
 0x101   : > { %578 = vmatpush1.bf16.msra.mxu0 %v1299_v2  ;;  %v459_v6 = vld [vmem:[%s2033_s22 + $0x8] sm:$0xff]  ;;  %v1305_v13 = vld [vmem:[#allocation5 + $0x30] sm:$0xff]   ;;  %v1307_v17 = vld [vmem:[#allocation5 + $0x40] sm:$0xff]   ;;  %1143 = vmatprep.mubr.msk.bf16.mxu1 %vm1677_vm2, %v1676_v1  ;;  %vm771_vm3 = vcmask 523264   ;;  %vm840_vm4 = vcmask 261120   ;;  %s1070_s16 = sshll.u32 %s2029_s25, 3 }
 0x102   : > { %579 = vmatprep.subr.bf16.mxu0 %v1675_v0  ;;  %v461_v8 = vpack.c.bf16 %v459_v6, %v459_v6  ;;  %v1312_v9 = vld [vmem:[#allocation8] sm:$0xff]   ;;  %v1313_v10 = vld [vmem:[#allocation8 + $0x8] sm:$0xff]   ;;  %v1314_v12 = vld [vmem:[#allocation8 + $0x10] sm:$0xff]   ;;  %s1106_s20 = sshll.u32 %s1750_s15, 7  ;;  %s456_s13 = scalar_lea.vmem [#allocation17], %s1070_s16 }
 0x103   : > { %1128 = vmatpush3.bf16.msra.mxu1 %v1312_v9  ;;  %v1304_v11 = vld [vmem:[#allocation5 + $0x28] sm:$0xff]   ;;  %v1315_v14 = vld [vmem:[#allocation8 + $0x18] sm:$0xff]   ;;  %v1309_v20 = vld [vmem:[#allocation5 + $0x50] sm:$0xff]   ;;  %s900_s1 = sshll.u32 %s456_s13, 4  ;;  %s2174_s21 = sld [smem:[#allocation25_spill]]  ;;  %s2097_s1 = int_to_ptr.vmem [resolvable:$true] %s900_s1 }
 0x104   : > { %1085 = vmatprep.mubr.msk.bf16.mxu0 %vm569_vm0, %v461_v8  ;;  %1129 = vmatprep.subr.bf16.mxu1 %v1676_v1  ;;  %v1306_v15 = vld [vmem:[#allocation5 + $0x38] sm:$0xff]   ;;  %v1316_v16 = vld [vmem:[#allocation8 + $0x20] sm:$0xff]   ;;  %v1317_v18 = vld [vmem:[#allocation8 + $0x28] sm:$0xff]   ;;  %s887_s26 = scalar_lea.sflag [#allocation4], %s2029_s25  ;;  %s1580_s15 = scalar_lea.vmem %s2097_s1, 128 }
 0x105   : > { %580 = vmatpush1.bf16.msra.mxu0 %v1300_v3  ;;  %v1308_v19 = vld [vmem:[#allocation5 + $0x48] sm:$0xff]   ;;  %v1310_v21 = vld [vmem:[#allocation5 + $0x58] sm:$0xff]   ;;  %v1311_v22 = vld [vmem:[#allocation5 + $0x60] ss:$0 sps:$4 sm:$0xff]   ;;  %p1581_p12 = scmp.ne.s32.totalorder %s2097_s1, %s1580_s15  ;;  %p2175_p1 = scmp.ne.s32.totalorder %s2162_s9, 0 }
 0x106   : > { %581 = vmatprep.subr.bf16.mxu0 %v1675_v0  ;;  %v458_v23 = vld [vmem:[%s2033_s22] sm:$0xff]  ;;  %v575_v24 = vsel %vm573_vm1, %v1311_v22, 0  ;;  %v1320_v35 = vld [vmem:[#allocation11] sm:$0xff]   ;;  %v1322_v38 = vld [vmem:[#allocation11 + $0x10] sm:$0xff]   ;;  %s1678_s28 = smov [#allocation17]  }
 0x107   : > { %1130 = vmatpush3.bf16.msra.mxu1 %v1313_v10  ;;  %v460_v25 = vpack.c.bf16 %v458_v23, %v458_v23  ;;  %v1318_v26 = vld [vmem:[#allocation8 + $0x30] sm:$0xff]   ;;  %v1319_v27 = vld [vmem:[#allocation8 + $0x38] sm:$0xff]   ;;  %v1086_v40 = vld [vmem:[#allocation10] ss:$0 sm:$0xff]  ;;  %p1582_p13 = pnand %p1581_p12, %p2175_p1  ;;  %s1584_s29 = sshll.u32 %s1678_s28, 4  ;;  %s1585_s29 = int_to_ptr.vmem [resolvable:$false] %s1584_s29 }
 0x108   : > { %1131 = vmatprep.subr.bf16.mxu1 %v1676_v1  ;;  %v1071_v28 = vld [vmem:[#allocation7] ss:$0 sm:$0xff]  ;;  %v1321_v37 = vld [vmem:[#allocation11 + $0x8] sm:$0xff]   ;;  %v1095_v50 = vld [vmem:[#allocation13] ss:$0 sm:$0xff]  ;;  %s1586_s23 = scalar_lea.vmem %s1585_s29, 256  ;;  %p1587_p2 = scmp.lt.s32.totalorder %s2097_s1, %s1585_s29 }
 0x109   : > { %582 = vmatpush1.bf16.msra.mxu0 %v1301_v4  ;;  %v1323_v39 = vld [vmem:[#allocation11 + $0x18] sm:$0xff]   ;;  %v1324_v47 = vld [vmem:[#allocation14] sm:$0xff]   ;;  %v1325_v49 = vld [vmem:[#allocation14 + $0x8] sm:$0xff]   ;;  %s2095_s18 = scalar_lea.hbm %s2174_s21, %s1106_s20  ;;  %p1583_p0 = pneg %p1582_p13 }
 0x10a   : > { %583 = vmatprep.subr.bf16.mxu0 %v1675_v0  ;;  %v1101_v58 = vld [vmem:[#allocation16] ss:$0 sm:$0xff]  ;;  %p1588_p3 = scmp.lt.s32.totalorder %s1586_s23, %s1580_s15 }
 0x10b   : > { %1132 = vmatpush3.bf16.msra.mxu1 %v1314_v12 }
 0x10c   : > { %1133 = vmatprep.subr.bf16.mxu1 %v1676_v1  ;;  %p1589_p4 = por %p1588_p3, %p1587_p2 }
 0x10d   : > { %584 = vmatpush1.bf16.msra.mxu0 %v1302_v5 }
 0x10e   : > { %585 = vmatprep.subr.bf16.mxu0 %v1675_v0  ;;  %p1590_p10 = pnand %p1589_p4, %p1583_p0 }
 0x10f   : > { %1134 = vmatpush3.bf16.msra.mxu1 %v1315_v14 }
 0x110   : > { %1135 = vmatprep.subr.bf16.mxu1 %v1676_v1 }
 0x111   : > { %586 = vmatpush1.bf16.msra.mxu0 %v1303_v7 }
 0x112   : > { %587 = vmatprep.subr.bf16.mxu0 %v1675_v0 }
 0x113   : > { %1136 = vmatpush3.bf16.msra.mxu1 %v1316_v16 }
 0x114   : > { %1137 = vmatprep.subr.bf16.mxu1 %v1676_v1 }
 0x115   : > { %588 = vmatpush1.bf16.msra.mxu0 %v1304_v11 }
 0x116   : > { %589 = vmatprep.subr.bf16.mxu0 %v1675_v0 }
 0x117   : > { %1138 = vmatpush3.bf16.msra.mxu1 %v1317_v18 }
 0x118   : > { %1139 = vmatprep.subr.bf16.mxu1 %v1676_v1 }
 0x119   : > { %590 = vmatpush1.bf16.msra.mxu0 %v1305_v13 }
 0x11a   : > { %591 = vmatprep.subr.bf16.mxu0 %v1675_v0 }
 0x11b   : > { %1140 = vmatpush3.bf16.msra.mxu1 %v1318_v26 }
 0x11c   : > { %1141 = vmatprep.subr.bf16.mxu1 %v1676_v1 }
 0x11d   : > { %592 = vmatpush1.bf16.msra.mxu0 %v1306_v15 }
 0x11e   : > { %593 = vmatprep.subr.bf16.mxu0 %v1675_v0 }
 0x11f   : > { %1142 = vmatpush3.bf16.msra.mxu1 %v1319_v27 }
 0x120   : > { %1147 = vmatprep.subr.bf16.mxu1 %v1676_v1 }
 0x121   : > { %594 = vmatpush1.bf16.msra.mxu0 %v1307_v17 }
 0x122   : > { %595 = vmatprep.subr.bf16.mxu0 %v1675_v0 }
 0x125   : > { %596 = vmatpush1.bf16.msra.mxu0 %v1308_v19 }
 0x126   : > { %597 = vmatprep.subr.bf16.mxu0 %v1675_v0 }
 0x129   : > { %598 = vmatpush1.bf16.msra.mxu0 %v1309_v20 }
 0x12a   : > { %599 = vmatprep.subr.bf16.mxu0 %v1675_v0 }
 0x12d   : > { %600 = vmatpush1.bf16.msra.mxu0 %v1310_v21 }
 0x12e   : > { %601 = vmatprep.subr.bf16.mxu0 %v1675_v0 }
 0x131   : > { %602 = vmatpush1.bf16.msra.mxu0 %v575_v24 }
 0x134   : > { %610 = vmatmul.mubr.bf16.vlgmr.msra.gmra.mrb[0].mxu0 %v460_v25 }
 0x207   : > { %v611_v29 = vpop.f32.mrb[0].mxu0 }
 0x208   : > { %v612_v30 = vadd.f32 %v1071_v28, %v611_v29  ;;  %v613_v31 = vpop.f32.mrb[1].mxu0 }
 0x209   : > { %v614_v32 = vpop.f32.mrb[2].mxu0 }
 0x20a   : > { %v617_v33 = vmax.f32 %v612_v30, 0.0  ;;  %v615_v34 = vpop.f32.mrb[3].mxu0 }
 0x20c   : > { %v618_v36 = vpack.c.bf16 %v617_v33, %v617_v33 }
 0x20e   : > { %1144 = vmatmul.mubr.bf16.vlgmr.msra.gmra.mrb[0].mxu1 %v618_v36 }
 0x20f   : > { %1148 = vmatpush3.bf16.msra.mxu1 %v1320_v35  ;;  %1155 = vmatprep.mubr.msk.bf16.mxu1 %vm1677_vm2, %v1676_v1 }
 0x210   : > { %1149 = vmatprep.subr.bf16.mxu1 %v1676_v1 }
 0x213   : > { %1150 = vmatpush3.bf16.msra.mxu1 %v1321_v37 }
 0x214   : > { %1151 = vmatprep.subr.bf16.mxu1 %v1676_v1 }
 0x217   : > { %1152 = vmatpush3.bf16.msra.mxu1 %v1322_v38 }
 0x218   : > { %1153 = vmatprep.subr.bf16.mxu1 %v1676_v1 }
 0x21b   : > { %1154 = vmatpush3.bf16.msra.mxu1 %v1323_v39 }
 0x21c   : > { %1159 = vmatprep.subr.bf16.mxu1 %v1676_v1 }
 0x2e1   : > { %v724_v41 = vpop.f32.mrb[0].mxu1 }
 0x2e2   : > { %v725_v42 = vadd.f32 %v1086_v40, %v724_v41  ;;  %v1145_v43 = vpop.f32.mrb[1].mxu1 }
 0x2e3   : > { %v727_v44 = vpop.f32.mrb[2].mxu1 }
 0x2e4   : > { %v730_v45 = vmax.f32 %v725_v42, 0.0  ;;  %v1146_v46 = vpop.f32.mrb[3].mxu1 }
 0x2e6   : > { %v731_v48 = vpack.c.bf16 %v730_v45, %v730_v45 }
 0x2e8   : > { %1156 = vmatmul.mubr.msk.bf16.vlgmr.msra.gmra.mrb[4].mxu1 %vm771_vm3, %v731_v48 }
 0x2e9   : > { %1160 = vmatpush3.bf16.msra.mxu1 %v1324_v47  ;;  %1163 = vmatprep.mubr.msk.bf16.mxu1 %vm1677_vm2, %v1676_v1 }
 0x2ea   : > { %1161 = vmatprep.subr.bf16.mxu1 %v1676_v1 }
 0x2ed   : > { %1162 = vmatpush3.bf16.msra.mxu1 %v1325_v49 }
 0x3bb   : > { %v809_v51 = vpop.f32.mrb[4].mxu1 }
 0x3bc   : > { %v810_v52 = vadd.f32 %v1095_v50, %v809_v51  ;;  %v1157_v53 = vpop.f32.mrb[5].mxu1 }
 0x3bd   : > { %v812_v54 = vpop.f32.mrb[6].mxu1 }
 0x3be   : > { %v815_v55 = vmax.f32 %v810_v52, 0.0  ;;  %v1158_v56 = vpop.f32.mrb[7].mxu1 }
 0x3c0   : > { %v816_v57 = vpack.c.bf16 %v815_v55, %v815_v55 }
 0x3c2   : > { %1164 = vmatmul.mubr.msk.bf16.vlgmr.msra.gmra.mrb[8].mxu1 %vm840_vm4, %v816_v57 }
 0x495   : > { %v878_v59 = vpop.f32.mrb[8].mxu1 }
 0x496   : > { %v879_v60 = vadd.f32 %v1101_v58, %v878_v59  ;;  %v1165_v61 = vpop.f32.mrb[9].mxu1 }
 0x497   : > { %v881_v62 = vpop.f32.mrb[10].mxu1 }
 0x498   : > { %v884_v63 = vmax.f32 %v879_v60, 0.0  ;;  %v1166_v0 = vpop.f32.mrb[11].mxu1 }
 0x49a   : > { %885 = vst [vmem:[%s456_s13] sm:$0xff] %v884_v63 }
 0x49b   : > { %1593 = shalt.err (!%p1590_p10)
}
 0x49c   : > { %s1594_s25 = scalar_lea.hbm %s2095_s18, 128  ;;  %s1598_s20 = scalar_lea.hbm %s2174_s21, 256 }
 0x49d   : > { %p1595_p11 = scmp.ne.s32.totalorder %s2095_s18, %s1594_s25  ;;  %p1599_p7 = scmp.lt.u32.totalorder %s2095_s18, %s2174_s21 }
 0x49e   : > { %p1600_p6 = scmp.lt.u32.totalorder %s1598_s20, %s1594_s25  ;;  %p1602_p12 = scmp.lt.u32.totalorder %s1594_s25, %s2095_s18 }
 0x49f   : > { %p1596_p8 = pnand %p1595_p11, %p2175_p1 }
 0x4a0   : > { %p1601_p9 = por %p1600_p6, %p1599_p7 }
 0x4a1   : > { %p1597_p5 = pneg %p1596_p8 }
 0x4a2   : > { %p1603_p13 = por %p1602_p12, %p1601_p9 }
 0x4a4   : > { %p1604_p0 = pnand %p1603_p13, %p1597_p5 }
 0x4a6   : > { %1607 = shalt.err (!%p1604_p0)
}
 0x4a7   : > { %1201 = dma.vmem_to_hbm [thread:$0]  (%p2175_p1), %s2097_s1, 128, %s2095_s18, %s887_s26  }
 0x4a8 PF: > { %s912_s14 = sand.u32 1, %s1650_s30   ;;  %p2176_p2 = scmp.ne.s32.totalorder %s2163_s24, 0 }
 0x4a9   : > { %p2177_p3 = scmp.ge.s32.totalorder %s1662_s12, 2  ;;  %s913_s15 = scalar_lea.sflag [#allocation4], %s912_s14 }
 0x4ab   : > { %p1233_p4 = pnand %p2177_p3, %p2176_p2 }
 0x4ad   : > { %1645 = dma.done.wait (!%p1233_p4), %s913_s15, 128  }
 0x4ae   : > { %1647 = vsyncadd (!%p1233_p4), %s913_s15, 4294967168  ;;  %p26_p10 = scmp.ge.s32.totalorder %s1953_s19, 4   ;;  %s2178_s30 = smov %s1654_s10 }
 0x4af   : > { %s2179_s10 = smov %s1658_s11  ;;  %s2180_s11 = smov %s1964_s17 }
 0x4b0   : > { %s2181_s12 = smov %s1953_s19  ;;  %28 = sbr.rel (!%p26_p10) target bundleno = 12 (0xc), region = 133 }
 0x4b7   :  { %918 = vsyncpa [#allocation3], 1 }
 0x4b8   :  { %920 = vsyncpa [#allocation3 + $0x1], 1 }
 0x4b9   :  { %921 = vsyncpa [#allocation6], 1 }
 0x4ba   :  { %922 = vsyncpa [#allocation9], 1 }
 0x4bb   :  { %923 = vsyncpa [#allocation12], 1 }
 0x4bc   :  { %924 = vsyncpa [#allocation15], 1 }
 0x4bd   :  { %925 = vsyncpa [#allocation4], 1 }
 0x4be   :  { %927 = vsyncpa [#allocation4 + $0x1], 1 }

</bundles_post_ra>
